<compile_context>
chip_gen: v6e
topology: v6e:2x2x1
jax: 0.10.0
libtpu: 0.0.40
codegen_flags: <defaults>
</compile_context>

<pallas_src>
import jax
import jax.numpy as jnp
from jax.experimental import pallas as pl
from jax.experimental.pallas import tpu as pltpu


_OUT_DIM = 32      # l2 out_features
_OUT_PAD = 128     # lane-dense output width (full-lane vst; wrapper slices to 32)


def _agent_kernel_factory(n_hidden, compute_dtype):
    """Build a kernel for a fixed (compile-time) number of hidden layers."""

    def kernel(*refs):
        if n_hidden > 0:
            idx_ref, w1_ref, b1_ref, wh_ref, bh_ref, w2_ref, b2_ref, out_ref = refs
        else:
            idx_ref, w1_ref, b1_ref, w2_ref, b2_ref, out_ref = refs
            wh_ref = bh_ref = None

        in_dim = w1_ref.shape[0]
        idx = idx_ref[...]                       # (b_tile, 1) int32

        # Batched one-hot built on-chip: (b_tile, in_dim). Exact in bf16 (0/1).
        # TODO(synk): for large in_dim (big obs_size) replace one-hot @ w1 with a
        # row gather of w1 (scalar-prefetch idx); at in_dim=32 the matmul is free.
        lane_ids = jax.lax.broadcasted_iota(jnp.int32, (idx.shape[0], in_dim), 1)
        x = (lane_ids == idx).astype(compute_dtype)

        # l1 + tanh  (bf16 MXU pass, f32 accumulate, f32 bias-add/tanh)
        h = jnp.tanh(
            jnp.dot(x, w1_ref[...], preferred_element_type=jnp.float32) + b1_ref[...]
        )

        # hidden layers (static unroll; layer count is small & compile-time)
        for i in range(n_hidden):
            h = jnp.tanh(
                jnp.dot(h.astype(compute_dtype), wh_ref[i],
                        preferred_element_type=jnp.float32) + bh_ref[i]
            )

        # l2 + tanh — w2/b2 are lane-padded to 128 so this store is lane-dense.
        out_ref[...] = jnp.tanh(
            jnp.dot(h.astype(compute_dtype), w2_ref[...],
                    preferred_element_type=jnp.float32) + b2_ref[...]
        ).astype(out_ref.dtype)

    return kernel


def _choose_b_tile(batch, requested):
    """Multiple of 8 (f32 sublane), capped so the grid keeps >= 2 steps (v7x)."""
    bt = max(8, (int(requested) // 8) * 8)
    while bt > 8 and pl.cdiv(batch, bt) < 2:
        bt = max(8, ((bt // 2) // 8) * 8)
    return bt


def agent_forward_batch(states, params, *, b_tile=256,
                        compute_dtype=jnp.bfloat16, out_dtype=jnp.float32):
    """states: (B,) float array. Returns (B, 32) in out_dtype.

    b_tile defaults to 256 (fills the v6e/v7x 256-wide MXU; 128 saturates v5e);
    it is automatically reduced to keep >= 2 grid steps for small batches.
    """
    w1, b1, wh, bh, w2, b2 = (params["w1"], params["b1"], params["wh"],
                              params["bh"], params["w2"], params["b2"])
    in_dim, hidden = w1.shape
    n_hidden = wh.shape[0]
    out_dim = w2.shape[1]

    states = jnp.asarray(states, jnp.float32)
    B = states.shape[0]
    bt = _choose_b_tile(B, b_tile)
    b_pad = pl.cdiv(B, bt) * bt
    grid = (b_pad // bt,)

    # int(2*state) truncates toward zero; the f32 cast matches that (f64 boundary
    # cases can differ by 1 — host-side semantics of the original module).
    idx = (2.0 * states).astype(jnp.int32)
    idx = jnp.pad(idx, (0, b_pad - B)).reshape(b_pad, 1)

    # Zero-pad l2 to 128 output lanes (padded cols -> tanh(0 + 0) = 0, sliced off).
    w2p = jnp.pad(w2, ((0, 0), (0, _OUT_PAD - out_dim)))
    b2p = jnp.pad(b2, ((0, 0), (0, _OUT_PAD - out_dim)))

    # Weights in compute dtype (bf16 MXU path); biases stay f32.
    w1c = w1.astype(compute_dtype)
    whc = wh.astype(compute_dtype)
    w2c = w2p.astype(compute_dtype)
    b1f = b1.astype(jnp.float32)
    bhf = bh.astype(jnp.float32)
    b2f = b2p.astype(jnp.float32)

    args = [idx, w1c, b1f]
    if n_hidden > 0:
        args += [whc, bhf]
    args += [w2c, b2f]

    # Advisory cost + VMEM budget.
    w_isz = jnp.dtype(compute_dtype).itemsize
    o_isz = jnp.dtype(out_dtype).itemsize
    weight_bytes = (in_dim * hidden + n_hidden * hidden * hidden
                    + hidden * _OUT_PAD) * w_isz
    bias_bytes = (hidden * (n_hidden + 1) + _OUT_PAD) * 4
    flops = 2 * b_pad * (in_dim * hidden + n_hidden * hidden * hidden
                         + hidden * _OUT_PAD)
    transcendentals = b_pad * (hidden * (n_hidden + 1) + _OUT_PAD)
    bytes_accessed = weight_bytes + bias_bytes + b_pad * (4 + _OUT_PAD * o_isz)
    cost = pl.CostEstimate(flops=int(flops),
                           transcendentals=int(transcendentals),
                           bytes_accessed=int(bytes_accessed))

    def _compiler_params(single_buffer):
        buf = 1 if single_buffer else 2
        vmem_needed = (buf * (weight_bytes + bias_bytes)
                       + 2 * bt * (4 + _OUT_PAD * o_isz)          # idx + out pipelines
                       + bt * (in_dim + 2 * hidden + _OUT_PAD) * 4)  # live activations
        kw = {}
        if vmem_needed > 32 * 2**20:
            # TODO(synk): for very large (n_hidden, H, H) stacks on v7x (64 MiB VMEM),
            # switch the hidden weights to per-layer manual DMA instead of raising the limit.
            kw["vmem_limit_bytes"] = int(min(64 * 2**20, 2 * vmem_needed))
        return pltpu.CompilerParams(dimension_semantics=("parallel",), **kw)

    def _in_specs(single_buffer):
        kw = {"pipeline_mode": pl.Buffered(1)} if single_buffer else {}

        def wspec(shape):
            # Grid-invariant weight/bias block: constant index map, single buffer.
            return pl.BlockSpec(shape, lambda b, _s=shape: (0,) * len(_s), **kw)

        specs = [pl.BlockSpec((bt, 1), lambda b: (b, 0)),          # idx column
                 wspec((in_dim, hidden)),                          # w1
                 wspec((1, hidden))]                               # b1
        if n_hidden > 0:
            specs += [wspec((n_hidden, hidden, hidden)),           # wh
                      wspec((n_hidden, 1, hidden))]                # bh
        specs += [wspec((hidden, _OUT_PAD)),                       # w2 (padded)
                  wspec((1, _OUT_PAD))]                            # b2 (padded)
        return specs

    def _run(single_buffer):
        return pl.pallas_call(
            _agent_kernel_factory(n_hidden, compute_dtype),
            out_shape=jax.ShapeDtypeStruct((b_pad, _OUT_PAD), out_dtype),
            grid=grid,
            in_specs=_in_specs(single_buffer),
            out_specs=pl.BlockSpec((bt, _OUT_PAD), lambda b: (b, 0)),
            compiler_params=_compiler_params(single_buffer),
            cost_estimate=cost,
        )(*args)

    try:
        out = _run(True)
    except Exception:
        # Fallback if pl.Buffered(1) is not supported by this jax build:
        # default 2-deep pipelining (weights are still never re-DMA'd).
        out = _run(False)

    return out[:B, :out_dim]


def agent_forward(state, params, *, compute_dtype=jnp.bfloat16):
    """Single-state forward matching Agent.forward: returns (32,)."""
    states = jnp.reshape(jnp.asarray(state, jnp.float32), (1,))
    return agent_forward_batch(states, params, compute_dtype=compute_dtype)[0]


def make_params(key, obs_size, n_hidden_layers):
    """Deterministic 'uniform_linear_layer'-style init (uniform weights, small scale)."""
    in_dim = 2 * obs_size
    hidden = 2 * obs_size
    out_dim = _OUT_DIM
    k = jax.random.split(key, 3 + 2 * n_hidden_layers)
    scale = 0.1
    w1 = jax.random.uniform(k[0], (in_dim, hidden), jnp.float32, 0.0, scale)
    b1 = jnp.full((1, hidden), -0.02, jnp.float32)
    if n_hidden_layers > 0:
        wh = jnp.stack([
            jax.random.uniform(k[1 + i], (hidden, hidden), jnp.float32, 0.0, scale)
            for i in range(n_hidden_layers)
        ])
        bh = jnp.full((n_hidden_layers, 1, hidden), -0.02, jnp.float32)
    else:
        wh = jnp.zeros((0, hidden, hidden), jnp.float32)
        bh = jnp.zeros((0, 1, hidden), jnp.float32)
    w2 = jax.random.uniform(k[1 + n_hidden_layers], (hidden, out_dim), jnp.float32, 0.0, scale)
    b2 = jnp.full((1, out_dim), -0.02, jnp.float32)
    return {"w1": w1, "b1": b1, "wh": wh, "bh": bh, "w2": w2, "b2": b2}


def agent_forward_ref(states, params):
    """Plain-JAX batched reference (f32) for correctness checking. Returns (B, 32)."""
    states = jnp.asarray(states, jnp.float32)
    idx = (2.0 * states).astype(jnp.int32)
    in_dim = params["w1"].shape[0]
    x = jax.nn.one_hot(idx, in_dim, dtype=jnp.float32)
    h = jnp.tanh(x @ params["w1"] + params["b1"])
    for i in range(params["wh"].shape[0]):
        h = jnp.tanh(h @ params["wh"][i] + params["bh"][i])
    return jnp.tanh(h @ params["w2"] + params["b2"])


if __name__ == "__main__":
    obs_size = 16          # -> input dim 32, hidden 32, output 32
    n_hidden_layers = 2

    params = make_params(jax.random.PRNGKey(0), obs_size, n_hidden_layers)

    # Batched path: 16 states; b_tile auto-reduces to 8 so the grid keeps 2 steps.
    states = jnp.arange(16, dtype=jnp.float32) * 0.5     # idx = 0..15, all < 32
    ref_b = agent_forward_ref(states, params)

    # Default bf16-MXU path (f32 accumulation) — looser tolerance.
    out_bf16 = jax.block_until_ready(agent_forward_batch(states, params))
    assert out_bf16.shape == (16, 32)
    assert jnp.allclose(out_bf16, ref_b, atol=2e-2, rtol=2e-2), "bf16 path mismatch vs reference"

    # Exact f32 path — tight tolerance.
    out_f32 = jax.block_until_ready(
        agent_forward_batch(states, params, compute_dtype=jnp.float32))
    assert out_f32.shape == (16, 32)
    assert jnp.allclose(out_f32, ref_b, atol=1e-5, rtol=1e-5), "f32 path mismatch vs reference"

    # Single-state path (original Agent.forward semantics): returns (32,)
    out_1 = jax.block_until_ready(agent_forward(5.0, params))
    ref_1 = agent_forward_ref(jnp.array([5.0], jnp.float32), params)[0]
    assert out_1.shape == (32,)
    assert jnp.allclose(out_1, ref_1, atol=2e-2, rtol=2e-2), "single-state mismatch vs reference"

    print("KERNEL_OK")
</pallas_src>

<mosaic_0001>
module attributes {stable_mosaic.version = 11 : i64} {
  func.func @kernel(%arg0: i32, %arg1: memref<8x1xi32, #tpu.memory_space<vmem>>, %arg2: memref<32x32xbf16, #tpu.memory_space<vmem>>, %arg3: memref<1x32xf32, #tpu.memory_space<vmem>>, %arg4: memref<2x32x32xbf16, #tpu.memory_space<vmem>>, %arg5: memref<2x1x32xf32, #tpu.memory_space<vmem>>, %arg6: memref<32x128xbf16, #tpu.memory_space<vmem>>, %arg7: memref<1x128xf32, #tpu.memory_space<vmem>>, %arg8: memref<8x128xf32, #tpu.memory_space<vmem>>) attributes {dimension_semantics = [#tpu.dimension_semantics<parallel>], iteration_bounds = array<i64: 2>, scalar_prefetch = 0 : i64, scratch_operands = 0 : i64, tpu.core_type = #tpu.core_type<tc>, window_params = [{transform_indices = @transform_0, window_bounds = array<i64: 8, 1>}, {pipeline_mode = #tpu.pipeline_mode<synchronous>, transform_indices = @transform_1, window_bounds = array<i64: 32, 32>}, {pipeline_mode = #tpu.pipeline_mode<synchronous>, transform_indices = @transform_2, window_bounds = array<i64: 1, 32>}, {pipeline_mode = #tpu.pipeline_mode<synchronous>, transform_indices = @transform_3, window_bounds = array<i64: 2, 32, 32>}, {pipeline_mode = #tpu.pipeline_mode<synchronous>, transform_indices = @transform_4, window_bounds = array<i64: 2, 1, 32>}, {pipeline_mode = #tpu.pipeline_mode<synchronous>, transform_indices = @transform_5, window_bounds = array<i64: 32, 128>}, {pipeline_mode = #tpu.pipeline_mode<synchronous>, transform_indices = @transform_6, window_bounds = array<i64: 1, 128>}, {transform_indices = @transform_7, window_bounds = array<i64: 8, 128>}]} {
    %c0 = arith.constant 0 : index
    %c0_0 = arith.constant 0 : index
    %0 = vector.load %arg1[%c0, %c0_0] : memref<8x1xi32, #tpu.memory_space<vmem>>, vector<8x1xi32>
    %1 = tpu.iota {dimensions = array<i32: 1>} : vector<8x32xi32>
    %2 = vector.broadcast %0 : vector<8x1xi32> to vector<8x32xi32>
    %3 = arith.cmpi eq, %1, %2 : vector<8x32xi32>
    %4 = arith.extui %3 : vector<8x32xi1> to vector<8x32xi32>
    %5 = arith.sitofp %4 : vector<8x32xi32> to vector<8x32xf32>
    %6 = arith.truncf %5 : vector<8x32xf32> to vector<8x32xbf16>
    %c0_1 = arith.constant 0 : index
    %c0_2 = arith.constant 0 : index
    %7 = vector.load %arg2[%c0_1, %c0_2] : memref<32x32xbf16, #tpu.memory_space<vmem>>, vector<32x32xbf16>
    %cst = arith.constant dense<0.000000e+00> : vector<8x32xf32>
    %8 = tpu.matmul %6, %7, %cst {dimension_numbers = #tpu.dot_dimension_numbers<[1], [0], [0], [1], [0, 0, 1, 1], [], []>} : vector<8x32xbf16>, vector<32x32xbf16>, vector<8x32xf32> -> vector<8x32xf32>
    %c0_3 = arith.constant 0 : index
    %c0_4 = arith.constant 0 : index
    %9 = vector.load %arg3[%c0_3, %c0_4] : memref<1x32xf32, #tpu.memory_space<vmem>>, vector<1x32xf32>
    %10 = vector.broadcast %9 : vector<1x32xf32> to vector<8x32xf32>
    %11 = arith.addf %8, %10 : vector<8x32xf32>
    %12 = math.tanh %11 : vector<8x32xf32>
    %13 = arith.truncf %12 : vector<8x32xf32> to vector<8x32xbf16>
    %c0_5 = arith.constant 0 : index
    %c0_6 = arith.constant 0 : index
    %c0_7 = arith.constant 0 : index
    %14 = vector.load %arg4[%c0_5, %c0_6, %c0_7] : memref<2x32x32xbf16, #tpu.memory_space<vmem>>, vector<1x32x32xbf16>
    %15 = vector.shape_cast %14 : vector<1x32x32xbf16> to vector<32x32xbf16>
    %cst_8 = arith.constant dense<0.000000e+00> : vector<8x32xf32>
    %16 = tpu.matmul %13, %15, %cst_8 {dimension_numbers = #tpu.dot_dimension_numbers<[1], [0], [0], [1], [0, 0, 1, 1], [], []>} : vector<8x32xbf16>, vector<32x32xbf16>, vector<8x32xf32> -> vector<8x32xf32>
    %c0_9 = arith.constant 0 : index
    %c0_10 = arith.constant 0 : index
    %c0_11 = arith.constant 0 : index
    %17 = vector.load %arg5[%c0_9, %c0_10, %c0_11] : memref<2x1x32xf32, #tpu.memory_space<vmem>>, vector<1x1x32xf32>
    %18 = vector.shape_cast %17 : vector<1x1x32xf32> to vector<1x32xf32>
    %19 = vector.broadcast %18 : vector<1x32xf32> to vector<8x32xf32>
    %20 = arith.addf %16, %19 : vector<8x32xf32>
    %21 = math.tanh %20 : vector<8x32xf32>
    %22 = arith.truncf %21 : vector<8x32xf32> to vector<8x32xbf16>
    %c1 = arith.constant 1 : index
    %c0_12 = arith.constant 0 : index
    %c0_13 = arith.constant 0 : index
    %23 = vector.load %arg4[%c1, %c0_12, %c0_13] : memref<2x32x32xbf16, #tpu.memory_space<vmem>>, vector<1x32x32xbf16>
    %24 = vector.shape_cast %23 : vector<1x32x32xbf16> to vector<32x32xbf16>
    %cst_14 = arith.constant dense<0.000000e+00> : vector<8x32xf32>
    %25 = tpu.matmul %22, %24, %cst_14 {dimension_numbers = #tpu.dot_dimension_numbers<[1], [0], [0], [1], [0, 0, 1, 1], [], []>} : vector<8x32xbf16>, vector<32x32xbf16>, vector<8x32xf32> -> vector<8x32xf32>
    %c1_15 = arith.constant 1 : index
    %c0_16 = arith.constant 0 : index
    %c0_17 = arith.constant 0 : index
    %26 = vector.load %arg5[%c1_15, %c0_16, %c0_17] : memref<2x1x32xf32, #tpu.memory_space<vmem>>, vector<1x1x32xf32>
    %27 = vector.shape_cast %26 : vector<1x1x32xf32> to vector<1x32xf32>
    %28 = vector.broadcast %27 : vector<1x32xf32> to vector<8x32xf32>
    %29 = arith.addf %25, %28 : vector<8x32xf32>
    %30 = math.tanh %29 : vector<8x32xf32>
    %31 = arith.truncf %30 : vector<8x32xf32> to vector<8x32xbf16>
    %c0_18 = arith.constant 0 : index
    %c0_19 = arith.constant 0 : index
    %32 = vector.load %arg6[%c0_18, %c0_19] : memref<32x128xbf16, #tpu.memory_space<vmem>>, vector<32x128xbf16>
    %cst_20 = arith.constant dense<0.000000e+00> : vector<8x128xf32>
    %33 = tpu.matmul %31, %32, %cst_20 {dimension_numbers = #tpu.dot_dimension_numbers<[1], [0], [0], [1], [0, 0, 1, 1], [], []>} : vector<8x32xbf16>, vector<32x128xbf16>, vector<8x128xf32> -> vector<8x128xf32>
    %c0_21 = arith.constant 0 : index
    %c0_22 = arith.constant 0 : index
    %34 = vector.load %arg7[%c0_21, %c0_22] : memref<1x128xf32, #tpu.memory_space<vmem>>, vector<1x128xf32>
    %35 = vector.broadcast %34 : vector<1x128xf32> to vector<8x128xf32>
    %36 = arith.addf %33, %35 : vector<8x128xf32>
    %37 = math.tanh %36 : vector<8x128xf32>
    %c0_23 = arith.constant 0 : index
    %c0_24 = arith.constant 0 : index
    %38 = vector.load %arg8[%c0_23, %c0_24] : memref<8x128xf32, #tpu.memory_space<vmem>>, vector<8x128xf32>
    tpu.vector_store %arg8[%c0_23, %c0_24], %37 {strides = array<i32>} : memref<8x128xf32, #tpu.memory_space<vmem>>, vector<8x128xf32>,
    return
  }
  func.func @transform_0(%arg0: i32) -> (i32, i32) {
    %c0_i32 = arith.constant 0 : i32
    %c0_i32_0 = arith.constant 0 : i32
    return %arg0, %c0_i32 : i32, i32
  }
  func.func @transform_1(%arg0: i32) -> (i32, i32) {
    %c0_i32 = arith.constant 0 : i32
    %c0_i32_0 = arith.constant 0 : i32
    %c0_i32_1 = arith.constant 0 : i32
    return %c0_i32, %c0_i32_0 : i32, i32
  }
  func.func @transform_2(%arg0: i32) -> (i32, i32) {
    %c0_i32 = arith.constant 0 : i32
    %c0_i32_0 = arith.constant 0 : i32
    %c0_i32_1 = arith.constant 0 : i32
    return %c0_i32, %c0_i32_0 : i32, i32
  }
  func.func @transform_3(%arg0: i32) -> (i32, i32, i32) {
    %c0_i32 = arith.constant 0 : i32
    %c0_i32_0 = arith.constant 0 : i32
    %c0_i32_1 = arith.constant 0 : i32
    %c0_i32_2 = arith.constant 0 : i32
    return %c0_i32, %c0_i32_0, %c0_i32_1 : i32, i32, i32
  }
  func.func @transform_4(%arg0: i32) -> (i32, i32, i32) {
    %c0_i32 = arith.constant 0 : i32
    %c0_i32_0 = arith.constant 0 : i32
    %c0_i32_1 = arith.constant 0 : i32
    %c0_i32_2 = arith.constant 0 : i32
    return %c0_i32, %c0_i32_0, %c0_i32_1 : i32, i32, i32
  }
  func.func @transform_5(%arg0: i32) -> (i32, i32) {
    %c0_i32 = arith.constant 0 : i32
    %c0_i32_0 = arith.constant 0 : i32
    %c0_i32_1 = arith.constant 0 : i32
    return %c0_i32, %c0_i32_0 : i32, i32
  }
  func.func @transform_6(%arg0: i32) -> (i32, i32) {
    %c0_i32 = arith.constant 0 : i32
    %c0_i32_0 = arith.constant 0 : i32
    %c0_i32_1 = arith.constant 0 : i32
    return %c0_i32, %c0_i32_0 : i32, i32
  }
  func.func @transform_7(%arg0: i32) -> (i32, i32) {
    %c0_i32 = arith.constant 0 : i32
    %c0_i32_0 = arith.constant 0 : i32
    return %arg0, %c0_i32 : i32, i32
  }
}

module attributes {stable_mosaic.version = 11 : i64} {
  func.func @kernel(%arg0: i32, %arg1: memref<8x1xi32, #tpu.memory_space<vmem>>, %arg2: memref<32x32xbf16, #tpu.memory_space<vmem>>, %arg3: memref<1x32xf32, #tpu.memory_space<vmem>>, %arg4: memref<2x32x32xbf16, #tpu.memory_space<vmem>>, %arg5: memref<2x1x32xf32, #tpu.memory_space<vmem>>, %arg6: memref<32x128xbf16, #tpu.memory_space<vmem>>, %arg7: memref<1x128xf32, #tpu.memory_space<vmem>>, %arg8: memref<8x128xf32, #tpu.memory_space<vmem>>) attributes {dimension_semantics = [#tpu.dimension_semantics<parallel>], iteration_bounds = array<i64: 2>, scalar_prefetch = 0 : i64, scratch_operands = 0 : i64, tpu.core_type = #tpu.core_type<tc>, window_params = [{transform_indices = @transform_0, window_bounds = array<i64: 8, 1>}, {pipeline_mode = #tpu.pipeline_mode<synchronous>, transform_indices = @transform_1, window_bounds = array<i64: 32, 32>}, {pipeline_mode = #tpu.pipeline_mode<synchronous>, transform_indices = @transform_2, window_bounds = array<i64: 1, 32>}, {pipeline_mode = #tpu.pipeline_mode<synchronous>, transform_indices = @transform_3, window_bounds = array<i64: 2, 32, 32>}, {pipeline_mode = #tpu.pipeline_mode<synchronous>, transform_indices = @transform_4, window_bounds = array<i64: 2, 1, 32>}, {pipeline_mode = #tpu.pipeline_mode<synchronous>, transform_indices = @transform_5, window_bounds = array<i64: 32, 128>}, {pipeline_mode = #tpu.pipeline_mode<synchronous>, transform_indices = @transform_6, window_bounds = array<i64: 1, 128>}, {transform_indices = @transform_7, window_bounds = array<i64: 8, 128>}]} {
    %c0 = arith.constant 0 : index
    %c0_0 = arith.constant 0 : index
    %0 = vector.load %arg1[%c0, %c0_0] : memref<8x1xi32, #tpu.memory_space<vmem>>, vector<8x1xi32>
    %1 = tpu.iota {dimensions = array<i32: 1>} : vector<8x32xi32>
    %2 = vector.broadcast %0 : vector<8x1xi32> to vector<8x32xi32>
    %3 = arith.cmpi eq, %1, %2 : vector<8x32xi32>
    %4 = arith.extui %3 : vector<8x32xi1> to vector<8x32xi32>
    %5 = arith.sitofp %4 : vector<8x32xi32> to vector<8x32xf32>
    %6 = arith.truncf %5 : vector<8x32xf32> to vector<8x32xbf16>
    %c0_1 = arith.constant 0 : index
    %c0_2 = arith.constant 0 : index
    %7 = vector.load %arg2[%c0_1, %c0_2] : memref<32x32xbf16, #tpu.memory_space<vmem>>, vector<32x32xbf16>
    %cst = arith.constant dense<0.000000e+00> : vector<8x32xf32>
    %8 = tpu.matmul %6, %7, %cst {dimension_numbers = #tpu.dot_dimension_numbers<[1], [0], [0], [1], [0, 0, 1, 1], [], []>} : vector<8x32xbf16>, vector<32x32xbf16>, vector<8x32xf32> -> vector<8x32xf32>
    %c0_3 = arith.constant 0 : index
    %c0_4 = arith.constant 0 : index
    %9 = vector.load %arg3[%c0_3, %c0_4] : memref<1x32xf32, #tpu.memory_space<vmem>>, vector<1x32xf32>
    %10 = vector.broadcast %9 : vector<1x32xf32> to vector<8x32xf32>
    %11 = arith.addf %8, %10 : vector<8x32xf32>
    %12 = math.tanh %11 : vector<8x32xf32>
    %13 = arith.truncf %12 : vector<8x32xf32> to vector<8x32xbf16>
    %c0_5 = arith.constant 0 : index
    %c0_6 = arith.constant 0 : index
    %c0_7 = arith.constant 0 : index
    %14 = vector.load %arg4[%c0_5, %c0_6, %c0_7] : memref<2x32x32xbf16, #tpu.memory_space<vmem>>, vector<1x32x32xbf16>
    %15 = vector.shape_cast %14 : vector<1x32x32xbf16> to vector<32x32xbf16>
    %cst_8 = arith.constant dense<0.000000e+00> : vector<8x32xf32>
    %16 = tpu.matmul %13, %15, %cst_8 {dimension_numbers = #tpu.dot_dimension_numbers<[1], [0], [0], [1], [0, 0, 1, 1], [], []>} : vector<8x32xbf16>, vector<32x32xbf16>, vector<8x32xf32> -> vector<8x32xf32>
    %c0_9 = arith.constant 0 : index
    %c0_10 = arith.constant 0 : index
    %c0_11 = arith.constant 0 : index
    %17 = vector.load %arg5[%c0_9, %c0_10, %c0_11] : memref<2x1x32xf32, #tpu.memory_space<vmem>>, vector<1x1x32xf32>
    %18 = vector.shape_cast %17 : vector<1x1x32xf32> to vector<1x32xf32>
    %19 = vector.broadcast %18 : vector<1x32xf32> to vector<8x32xf32>
    %20 = arith.addf %16, %19 : vector<8x32xf32>
    %21 = math.tanh %20 : vector<8x32xf32>
    %22 = arith.truncf %21 : vector<8x32xf32> to vector<8x32xbf16>
    %c1 = arith.constant 1 : index
    %c0_12 = arith.constant 0 : index
    %c0_13 = arith.constant 0 : index
    %23 = vector.load %arg4[%c1, %c0_12, %c0_13] : memref<2x32x32xbf16, #tpu.memory_space<vmem>>, vector<1x32x32xbf16>
    %24 = vector.shape_cast %23 : vector<1x32x32xbf16> to vector<32x32xbf16>
    %cst_14 = arith.constant dense<0.000000e+00> : vector<8x32xf32>
    %25 = tpu.matmul %22, %24, %cst_14 {dimension_numbers = #tpu.dot_dimension_numbers<[1], [0], [0], [1], [0, 0, 1, 1], [], []>} : vector<8x32xbf16>, vector<32x32xbf16>, vector<8x32xf32> -> vector<8x32xf32>
    %c1_15 = arith.constant 1 : index
    %c0_16 = arith.constant 0 : index
    %c0_17 = arith.constant 0 : index
    %26 = vector.load %arg5[%c1_15, %c0_16, %c0_17] : memref<2x1x32xf32, #tpu.memory_space<vmem>>, vector<1x1x32xf32>
    %27 = vector.shape_cast %26 : vector<1x1x32xf32> to vector<1x32xf32>
    %28 = vector.broadcast %27 : vector<1x32xf32> to vector<8x32xf32>
    %29 = arith.addf %25, %28 : vector<8x32xf32>
    %30 = math.tanh %29 : vector<8x32xf32>
    %31 = arith.truncf %30 : vector<8x32xf32> to vector<8x32xbf16>
    %c0_18 = arith.constant 0 : index
    %c0_19 = arith.constant 0 : index
    %32 = vector.load %arg6[%c0_18, %c0_19] : memref<32x128xbf16, #tpu.memory_space<vmem>>, vector<32x128xbf16>
    %cst_20 = arith.constant dense<0.000000e+00> : vector<8x128xf32>
    %33 = tpu.matmul %31, %32, %cst_20 {dimension_numbers = #tpu.dot_dimension_numbers<[1], [0], [0], [1], [0, 0, 1, 1], [], []>} : vector<8x32xbf16>, vector<32x128xbf16>, vector<8x128xf32> -> vector<8x128xf32>
    %c0_21 = arith.constant 0 : index
    %c0_22 = arith.constant 0 : index
    %34 = vector.load %arg7[%c0_21, %c0_22] : memref<1x128xf32, #tpu.memory_space<vmem>>, vector<1x128xf32>
    %35 = vector.broadcast %34 : vector<1x128xf32> to vector<8x128xf32>
    %36 = arith.addf %33, %35 : vector<8x128xf32>
    %37 = math.tanh %36 : vector<8x128xf32>
    %c0_23 = arith.constant 0 : index
    %c0_24 = arith.constant 0 : index
    %38 = vector.load %arg8[%c0_23, %c0_24] : memref<8x128xf32, #tpu.memory_space<vmem>>, vector<8x128xf32>
    tpu.vector_store %arg8[%c0_23, %c0_24], %37 {strides = array<i32>} : memref<8x128xf32, #tpu.memory_space<vmem>>, vector<8x128xf32>,
    return
  }
  func.func @transform_0(%arg0: i32) -> (i32, i32) {
    %c0_i32 = arith.constant 0 : i32
    %c0_i32_0 = arith.constant 0 : i32
    return %arg0, %c0_i32 : i32, i32
  }
  func.func @transform_1(%arg0: i32) -> (i32, i32) {
    %c0_i32 = arith.constant 0 : i32
    %c0_i32_0 = arith.constant 0 : i32
    %c0_i32_1 = arith.constant 0 : i32
    return %c0_i32, %c0_i32_0 : i32, i32
  }
  func.func @transform_2(%arg0: i32) -> (i32, i32) {
    %c0_i32 = arith.constant 0 : i32
    %c0_i32_0 = arith.constant 0 : i32
    %c0_i32_1 = arith.constant 0 : i32
    return %c0_i32, %c0_i32_0 : i32, i32
  }
  func.func @transform_3(%arg0: i32) -> (i32, i32, i32) {
    %c0_i32 = arith.constant 0 : i32
    %c0_i32_0 = arith.constant 0 : i32
    %c0_i32_1 = arith.constant 0 : i32
    %c0_i32_2 = arith.constant 0 : i32
    return %c0_i32, %c0_i32_0, %c0_i32_1 : i32, i32, i32
  }
  func.func @transform_4(%arg0: i32) -> (i32, i32, i32) {
    %c0_i32 = arith.constant 0 : i32
    %c0_i32_0 = arith.constant 0 : i32
    %c0_i32_1 = arith.constant 0 : i32
    %c0_i32_2 = arith.constant 0 : i32
    return %c0_i32, %c0_i32_0, %c0_i32_1 : i32, i32, i32
  }
  func.func @transform_5(%arg0: i32) -> (i32, i32) {
    %c0_i32 = arith.constant 0 : i32
    %c0_i32_0 = arith.constant 0 : i32
    %c0_i32_1 = arith.constant 0 : i32
    return %c0_i32, %c0_i32_0 : i32, i32
  }
  func.func @transform_6(%arg0: i32) -> (i32, i32) {
    %c0_i32 = arith.constant 0 : i32
    %c0_i32_0 = arith.constant 0 : i32
    %c0_i32_1 = arith.constant 0 : i32
    return %c0_i32, %c0_i32_0 : i32, i32
  }
  func.func @transform_7(%arg0: i32) -> (i32, i32) {
    %c0_i32 = arith.constant 0 : i32
    %c0_i32_0 = arith.constant 0 : i32
    return %arg0, %c0_i32 : i32, i32
  }
}

</mosaic_0001>

<bundles_post_ra>
// kernel: tpu_custom_call.1
= control target key start
LH: loop header
LB: loop body
LE: loop exit
PB: predicated region body
PF: predicated region fallthrough
CT: control target
= control target key end

     0   :  { %12 = vsyncpa [#allocation3], 0  ;;  %s1173_s0 = inlined_call_operand.vmem [shape: s32[16,1], index: 0, kind: input, shape index: {}]   ;;  %s1174_s1 = inlined_call_operand.vmem [shape: bf16[32,32], index: 1, kind: input, shape index: {}]   ;;  %s1175_s2 = inlined_call_operand.vmem [shape: f32[1,32], index: 2, kind: input, shape index: {}]   ;;  %s1176_s3 = inlined_call_operand.hbm [shape: bf16[2,32,32], index: 3, kind: input, shape index: {}]   ;;  %s1177_s4 = inlined_call_operand.vmem [shape: f32[2,1,32], index: 4, kind: input, shape index: {}]   ;;  %s1178_s5 = inlined_call_operand.hbm [shape: bf16[32,128], index: 5, kind: input, shape index: {}]   ;;  %s1179_s6 = inlined_call_operand.vmem [shape: f32[1,128], index: 6, kind: input, shape index: {}]   ;;  %s1180_s7 = inlined_call_operand.hbm [shape: f32[16,128], index: 7, kind: output, shape index: {}]  }
   0x1   :  { %13 = vsyncpa [#allocation6], 0 }
   0x2   :  { %14 = vsyncpa [#allocation4], 0 }
   0x3   :  { %16 = vsyncpa [#allocation4 + $0x1], 0  ;;  %s1013_s24 = smov 0   ;;  %s1015_s25 = smov 0  }
   0x4   :  { %s1017_s26 = smov 0   ;;  %s1019_s27 = smov 0  }
   0x5 LB: > { %s1034_s28 = sadd.s32 4294967295, %s963_s27   ;;  %s685_s29 = sadd.s32 4294967294, %s963_s27   ;;  %s963_s27 = sphi %s1019_s27, %s1194_s27   ;;  %s959_s26 = sphi %s1017_s26, %s1193_s26   ;;  %s955_s25 = sphi %s1015_s25, %s1192_s25   ;;  %s951_s24 = sphi %s1013_s24, %s1191_s24  }
   0x6   : > { %s1038_s30 = sadd.s32 1, %s963_s27   ;;  %s181_s8 = sadd.s32 1, %s959_s26 }
   0x7   : > { %s178_s9 = ssub.s32 %s963_s27, %s1038_s30  ;;  %p191_p0 = scmp.ne.s32.totalorder %s959_s26, %s955_s25 }
   0x8   : > { %p179_p1 = scmp.eq.s32.totalorder %s178_s9, 0  ;;  %p192_p2 = scmp.eq.s32.totalorder %s1034_s28, 1 }
   0x9   : > { %p197_p3 = scmp.ne.s32.totalorder %s955_s25, %s951_s24  ;;  %p198_p4 = scmp.eq.s32.totalorder %s685_s29, 1 }
   0xa   : > { %s1049_s10 = scalar_select %p179_p1, %s959_s26, %s181_s8  }
   0xb   : > { %p1051_p5 = por %p192_p2, %p191_p0  ;;  %p1055_p6 = por %p198_p4, %p197_p3 }
   0xc   : > { %p686_p7 = scmp.ge.s32.totalorder %s963_s27, 1  ;;  %p205_p8 = scmp.lt.s32.totalorder %s963_s27, 3 }
   0xd   : > { %s1183_s12 = scalar_select %p1055_p6, 1, 0 }
   0xe   : > { %p1181_p9 = scmp.eq.s32.totalorder %s1034_s28, 0  ;;  %p1062_p10 = pnand %p686_p7, %p205_p8 }
   0xf   : > { %s965_s14 = smov [#allocation2]   ;;  %s966_s17 = smov [#allocation5]  }
  0x10   : > { %s223_s15 = sshll.u32 %s965_s14, 4  ;;  %p771_p11 = pneg %p1062_p10  ;;  %s224_s15 = int_to_ptr.vmem [resolvable:$true] %s223_s15 }
  0x11   : > { %s239_s18 = sshll.u32 %s966_s17, 4  ;;  %s854_s19 = scalar_lea.vmem %s224_s15, 512  ;;  %s240_s18 = int_to_ptr.vmem [resolvable:$true] %s239_s18 }
  0x12   : > { %p1070_p12 = pnand %p1181_p9, %p771_p11  ;;  %p855_p0 = scmp.ne.s32.totalorder %s224_s15, %s854_s19 }
  0x13   : > { %p862_p3 = scmp.lt.s32.totalorder %s224_s15, %s224_s15  ;;  %p863_p4 = scmp.lt.s32.totalorder %s854_s19, %s854_s19 }
  0x14   : > { %p845_p13 = pneg %p1070_p12 }
  0x15   : > { %p864_p7 = por %p863_p4, %p862_p3 }
  0x16   : > { %p857_p1 = pnand %p855_p0, %p845_p13 }
  0x18   : > { %p858_p2 = pneg %p857_p1 }
  0x1a   : > { %p865_p8 = pnand %p864_p7, %p858_p2 }
  0x1c   : > { %868 = shalt.err (!%p865_p8)
}
  0x1d   : > { %s967_s20 = smov 64   ;;  %s968_s21 = smov 4  }
  0x1e   : > { %774 = dma.hbm_to_vmem [thread:$0]  (!%p1070_p12), %s1176_s3, 512, %s224_s15, [#allocation3], %s967_s20, %s967_s20, %s968_s21  }
  0x1f   : > { %s880_s29 = scalar_lea.vmem %s240_s18, 256  ;;  %p888_p9 = scmp.lt.s32.totalorder %s240_s18, %s240_s18 }
  0x20   : > { %p881_p11 = scmp.ne.s32.totalorder %s240_s18, %s880_s29  ;;  %p889_p6 = scmp.lt.s32.totalorder %s880_s29, %s880_s29 }
  0x22   : > { %p883_p0 = pnand %p881_p11, %p845_p13  ;;  %p890_p3 = por %p889_p6, %p888_p9 }
  0x24   : > { %p884_p1 = pneg %p883_p0 }
  0x26   : > { %p891_p2 = pnand %p890_p3, %p884_p1 }
  0x28   : > { %894 = shalt.err (!%p891_p2)
}
  0x29   : > { %777 = dma.hbm_to_vmem [thread:$0]  (!%p1070_p12), %s1178_s5, 256, %s240_s18, [#allocation6], %s967_s20, %s967_s20, %s968_s21  }
  0x2a   : > { %265 = sbr.rel (%p1062_p10) target bundleno = 1041 (0x411), region = 48  ;;  %p1186_p4 = scmp.eq.s32.totalorder (!%p1062_p10), %s1034_s28, 0 }
  0x2f   : > { %938 = dma.done.wait (%p1186_p4), [#allocation3], 512   ;;  %p1187_p13 = pmov %p1186_p4 }
  0x30   : > { %p1188_p7 = pmov %p1186_p4 }
  0x31   : > { %940 = vsyncadd (%p1187_p13), [#allocation3], 4294966784 }
  0x32   : > { %942 = dma.done.wait (%p1188_p7), [#allocation6], 256   ;;  %p1189_p6 = pmov %p1186_p4 }
  0x33   : > { %p300_p9 = scmp.lt.s32.totalorder %s1034_s28, 1  ;;  %v969_v0 = vmov 0   ;;  %v970_v1 = vmov 0.0   ;;  %vm971_vm0 = vmmov 0   ;;  %v827_v3 = vld [vmem:[%s1174_s1 + $0x8] sm:$0xff]   ;;  %v828_v4 = vld [vmem:[%s1174_s1] sm:$0xff]   ;;  %v306_v5 = vlaneseq }
  0x34   : > { %944 = vsyncadd (%p1189_p6), [#allocation6], 4294967040  ;;  %826 = vset.pattern.permute.xlu0 %v969_v0  ;;  %729 = vmatprep.subr.bf16.mxu0 %v970_v1  ;;  %vm338_vm2 = vcmask 261120   ;;  %v829_v10 = vld [vmem:[#allocation2 + $0x8] sm:$0xff]   ;;  %v830_v11 = vld [vmem:[#allocation2] sm:$0xff]   ;;  %s297_s16 = sand.u32 1, %s955_s25  }
  0x35   : > { %s301_s13 = scalar_select %p300_p9, %s1034_s28, 1  ;;  %737 = vmatprep.subr.bf16.mxu1 %v970_v1  ;;  %733 = vmatprep.mubr.msk.bf16.mxu0 %vm971_vm0, %v970_v1  ;;  %v307_v6 = vand.u32 127, %v306_v5  ;;  %v696_v12 = vld [vmem:[%s1175_s2] ss:$0 sm:$0xff]  ;;  %v831_v20 = vld [vmem:[#allocation2 + $0x18] sm:$0xff]   ;;  %v832_v21 = vld [vmem:[#allocation2 + $0x10] sm:$0xff]  }
  0x36   : > { %741 = vmatprep.mubr.msk.bf16.mxu1 %vm971_vm0, %v970_v1  ;;  %730 = vmatpush3.bf16.msra.mxu0 %v827_v3  ;;  %v700_v22 = vld [vmem:[%s1177_s4] ss:$0 sm:$0xff]  ;;  %v833_v30 = vld [vmem:[#allocation5 + $0x8] sm:$0xff]   ;;  %v705_v32 = vld [vmem:[%s1177_s4 + $0x1] ss:$0 sm:$0xff]  ;;  %s714_s18 = sshll.u32 %s1034_s28, 7 }
  0x37   : > { %s694_s14 = sshll.u32 %s301_s13, 3  ;;  %731 = vmatprep.subr.bf16.mxu0 %v970_v1  ;;  %738 = vmatpush3.bf16.msra.mxu1 %v829_v10  ;;  %v834_v31 = vld [vmem:[#allocation5] sm:$0xff]   ;;  %s1138_s23 = scalar_lea.hbm %s1180_s7, %s714_s18 }
  0x38   : > { %s303_s17 = scalar_lea.vmem %s1173_s0, %s694_s14  ;;  %739 = vmatprep.subr.bf16.mxu1 %v970_v1  ;;  %v709_v40 = vld [vmem:[%s1179_s6] ss:$0 sm:$0xff]  ;;  %s591_s29 = scalar_lea.sflag [#allocation4], %s297_s16 }
  0x39   : > { %v305_v2 = vld [vmem:[%s303_s17] sm:$0xff]  ;;  %s693_s17 = sshll.u32 %s297_s16, 3  ;;  %s972_s9 = smov [#allocation7]  }
  0x3a   : > { %309 = vperm.xlu0 %826, %v305_v2   ;;  %732 = vmatpush3.bf16.msra.mxu0 %v828_v4  ;;  %s299_s19 = scalar_lea.vmem [#allocation7], %s693_s17  ;;  %s899_s13 = sshll.u32 %s972_s9, 4  ;;  %s900_s13 = int_to_ptr.vmem [resolvable:$false] %s899_s13 }
  0x3b   : > { %745 = vmatprep.subr.bf16.mxu0 %v970_v1  ;;  %740 = vmatpush3.bf16.msra.mxu1 %v830_v11  ;;  %s604_s20 = sshll.u32 %s299_s19, 4  ;;  %s901_s28 = scalar_lea.vmem %s900_s13, 256  ;;  %s605_s20 = int_to_ptr.vmem [resolvable:$true] %s604_s20 }
  0x3c   : > { %753 = vmatprep.subr.bf16.mxu1 %v970_v1  ;;  %s895_s8 = scalar_lea.vmem %s605_s20, 128  ;;  %p902_p11 = scmp.lt.s32.totalorder %s605_s20, %s900_s13 }
  0x3d   : > { %p896_p10 = scmp.ne.s32.totalorder %s605_s20, %s895_s8  ;;  %p903_p0 = scmp.lt.s32.totalorder %s901_s28, %s895_s8 }
  0x3f   : > { %p897_p12 = pnand %p896_p10, %p1051_p5  ;;  %p904_p1 = por %p903_p0, %p902_p11 }
  0x41   : > { %p898_p8 = pneg %p897_p12 }
  0x43   : > { %p905_p3 = pnand %p904_p1, %p898_p8 }
  0xb5   : > { %v310_v7 = vpop.permute.xlu0 %309 }
  0xb6   : > { %vm311_vm1 = vcmp.eq.s32.totalorder %v307_v6, %v310_v7 }
  0xb7   : > { %v695_v8 = vsel %vm311_vm1, 1.0, %v970_v1 }
  0xb8   : > { %v314_v9 = vpack.c.bf16 %v695_v8, %v695_v8 }
  0xba   : > { %734 = vmatmul.mubr.msk.bf16.vlgmr.msra.gmra.mxu0 %vm338_vm2, %v314_v9 }
  0xbb   : > { %749 = vmatprep.mubr.msk.bf16.mxu0 %vm971_vm0, %v970_v1  ;;  %746 = vmatpush3.bf16.msra.mxu0 %v831_v20 }
  0xbc   : > { %747 = vmatprep.subr.bf16.mxu0 %v970_v1 }
  0xbf   : > { %748 = vmatpush3.bf16.msra.mxu0 %v832_v21 }
 0x17a   : > { %v376_v13 = vpop.f32.mrf.mxu0 }
 0x17b   : > { %v377_v14 = vadd.f32 %v696_v12, %v376_v13 }
 0x17c   : > { %v735_v15 = vpop.f32.mrf.mxu0 }
 0x17d   : > { %835 = vtanh.f32 %v377_v14 }
 0x17e   : > { %v379_v16 = vpop.f32.mrf.mxu0 }
 0x180   : > { %v736_v17 = vpop.f32.mrf.mxu0 }
 0x18a   : > { %v836_v18 = vpop.eup %835 }
 0x18b   : > { %v383_v19 = vpack.c.bf16 %v836_v18, %v836_v18 }
 0x18d   : > { %742 = vmatmul.mubr.msk.bf16.vlgmr.msra.gmra.mxu1 %vm338_vm2, %v383_v19 }
 0x18e   : > { %757 = vmatprep.mubr.msk.bf16.mxu1 %vm971_vm0, %v970_v1  ;;  %754 = vmatpush3.bf16.msra.mxu1 %v833_v30 }
 0x18f   : > { %755 = vmatprep.subr.bf16.mxu1 %v970_v1 }
 0x192   : > { %756 = vmatpush3.bf16.msra.mxu1 %v834_v31 }
 0x24d   : > { %v444_v23 = vpop.f32.mrf.mxu1 }
 0x24e   : > { %v445_v24 = vadd.f32 %v700_v22, %v444_v23 }
 0x24f   : > { %v743_v25 = vpop.f32.mrf.mxu1 }
 0x250   : > { %837 = vtanh.f32 %v445_v24 }
 0x251   : > { %v447_v26 = vpop.f32.mrf.mxu1 }
 0x253   : > { %v744_v27 = vpop.f32.mrf.mxu1 }
 0x25d   : > { %v838_v28 = vpop.eup %837 }
 0x25e   : > { %v451_v29 = vpack.c.bf16 %v838_v28, %v838_v28 }
 0x260   : > { %750 = vmatmul.mubr.msk.bf16.vlgmr.msra.gmra.mxu0 %vm338_vm2, %v451_v29 }
 0x320   : > { %v514_v33 = vpop.f32.mrf.mxu0 }
 0x321   : > { %v515_v34 = vadd.f32 %v705_v32, %v514_v33 }
 0x322   : > { %v751_v35 = vpop.f32.mrf.mxu0 }
 0x323   : > { %839 = vtanh.f32 %v515_v34 }
 0x324   : > { %v517_v36 = vpop.f32.mrf.mxu0 }
 0x326   : > { %v752_v37 = vpop.f32.mrf.mxu0 }
 0x330   : > { %v840_v38 = vpop.eup %839 }
 0x331   : > { %v521_v39 = vpack.c.bf16 %v840_v38, %v840_v38 }
 0x333   : > { %758 = vmatmul.mubr.msk.bf16.vlgmr.msra.gmra.mxu1 %vm338_vm2, %v521_v39 }
 0x3f3   : > { %v582_v41 = vpop.f32.mrf.mxu1 }
 0x3f4   : > { %v583_v42 = vadd.f32 %v709_v40, %v582_v41 }
 0x3f5   : > { %v759_v43 = vpop.f32.mrf.mxu1 }
 0x3f6   : > { %841 = vtanh.f32 %v583_v42 }
 0x3f7   : > { %v585_v44 = vpop.f32.mrf.mxu1 }
 0x3f9   : > { %v760_v45 = vpop.f32.mrf.mxu1 }
 0x403   : > { %v842_v46 = vpop.eup %841 }
 0x404   : > { %589 = vst [vmem:[%s299_s19] sm:$0xff] %v842_v46 }
 0x405   : > { %908 = shalt.err (!%p905_p3)
}
 0x406   : > { %s909_s14 = scalar_lea.hbm %s1138_s23, 128  ;;  %s913_s17 = scalar_lea.hbm %s1180_s7, 256 }
 0x407   : > { %p910_p2 = scmp.ne.s32.totalorder %s1138_s23, %s909_s14  ;;  %p914_p7 = scmp.lt.s32.totalorder %s1138_s23, %s1180_s7 }
 0x408   : > { %p915_p6 = scmp.lt.s32.totalorder %s913_s17, %s909_s14 }
 0x409   : > { %p911_p4 = pnand %p910_p2, %p1051_p5 }
 0x40a   : > { %p916_p9 = por %p915_p6, %p914_p7 }
 0x40b   : > { %p912_p13 = pneg %p911_p4 }
 0x40d   : > { %p917_p10 = pnand %p916_p9, %p912_p13 }
 0x40f   : > { %920 = shalt.err (!%p917_p10)
}
 0x410   : > { %769 = dma.vmem_to_hbm [thread:$0]  (%p1051_p5), %s605_s20, 128, %s1138_s23, %s591_s29  }
 0x411 PF: > { %p786_p12 = scmp.ge.s32.totalorder %s963_s27, 2  ;;  %s616_s21 = sand.u32 1, %s951_s24  }
 0x412   : > { %p1190_p8 = scmp.ne.s32.totalorder %s1183_s12, 0  ;;  %s617_s22 = scalar_lea.sflag [#allocation4], %s616_s21 }
 0x414   : > { %p779_p11 = pnand %p786_p12, %p1190_p8 }
 0x416   : > { %p780_p0 = pneg %p779_p11 }
 0x418   : > { %946 = dma.done.wait (%p780_p0), %s617_s22, 128  }
 0x419   : > { %948 = vsyncadd (%p780_p0), %s617_s22, 4294967168  ;;  %p19_p1 = scmp.ge.s32.totalorder %s1038_s30, 4   ;;  %s1191_s24 = smov %s955_s25 }
 0x41a   : > { %s1192_s25 = smov %s959_s26  ;;  %s1193_s26 = smov %s1049_s10 }
 0x41b   : > { %s1194_s27 = smov %s1038_s30  ;;  %21 = sbr.rel (!%p19_p1) target bundleno = 5 (0x5), region = 94 }
 0x420   :  { %622 = vsyncpa [#allocation3], 1 }
 0x421   :  { %624 = vsyncpa [#allocation3 + $0x1], 1 }
 0x422   :  { %625 = vsyncpa [#allocation6], 1 }
 0x423   :  { %626 = vsyncpa [#allocation4], 1 }
 0x424   :  { %628 = vsyncpa [#allocation4 + $0x1], 1 }

// kernel: tpu_custom_call.1
= control target key start
LH: loop header
LB: loop body
LE: loop exit
PB: predicated region body
PF: predicated region fallthrough
CT: control target
= control target key end

     0   :  { %12 = vsyncpa [#allocation3], 0  ;;  %s1173_s0 = inlined_call_operand.vmem [shape: s32[16,1], index: 0, kind: input, shape index: {}]   ;;  %s1174_s1 = inlined_call_operand.vmem [shape: bf16[32,32], index: 1, kind: input, shape index: {}]   ;;  %s1175_s2 = inlined_call_operand.vmem [shape: f32[1,32], index: 2, kind: input, shape index: {}]   ;;  %s1176_s3 = inlined_call_operand.hbm [shape: bf16[2,32,32], index: 3, kind: input, shape index: {}]   ;;  %s1177_s4 = inlined_call_operand.vmem [shape: f32[2,1,32], index: 4, kind: input, shape index: {}]   ;;  %s1178_s5 = inlined_call_operand.hbm [shape: bf16[32,128], index: 5, kind: input, shape index: {}]   ;;  %s1179_s6 = inlined_call_operand.vmem [shape: f32[1,128], index: 6, kind: input, shape index: {}]   ;;  %s1180_s7 = inlined_call_operand.hbm [shape: f32[16,128], index: 7, kind: output, shape index: {}]  }
   0x1   :  { %13 = vsyncpa [#allocation6], 0 }
   0x2   :  { %14 = vsyncpa [#allocation4], 0 }
   0x3   :  { %16 = vsyncpa [#allocation4 + $0x1], 0  ;;  %s1013_s24 = smov 0   ;;  %s1015_s25 = smov 0  }
   0x4   :  { %s1017_s26 = smov 0   ;;  %s1019_s27 = smov 0  }
   0x5 LB: > { %s1034_s28 = sadd.s32 4294967295, %s963_s27   ;;  %s685_s29 = sadd.s32 4294967294, %s963_s27   ;;  %s963_s27 = sphi %s1019_s27, %s1194_s27   ;;  %s959_s26 = sphi %s1017_s26, %s1193_s26   ;;  %s955_s25 = sphi %s1015_s25, %s1192_s25   ;;  %s951_s24 = sphi %s1013_s24, %s1191_s24  }
   0x6   : > { %s1038_s30 = sadd.s32 1, %s963_s27   ;;  %s181_s8 = sadd.s32 1, %s959_s26 }
   0x7   : > { %s178_s9 = ssub.s32 %s963_s27, %s1038_s30  ;;  %p191_p0 = scmp.ne.s32.totalorder %s959_s26, %s955_s25 }
   0x8   : > { %p179_p1 = scmp.eq.s32.totalorder %s178_s9, 0  ;;  %p192_p2 = scmp.eq.s32.totalorder %s1034_s28, 1 }
   0x9   : > { %p197_p3 = scmp.ne.s32.totalorder %s955_s25, %s951_s24  ;;  %p198_p4 = scmp.eq.s32.totalorder %s685_s29, 1 }
   0xa   : > { %s1049_s10 = scalar_select %p179_p1, %s959_s26, %s181_s8  }
   0xb   : > { %p1051_p5 = por %p192_p2, %p191_p0  ;;  %p1055_p6 = por %p198_p4, %p197_p3 }
   0xc   : > { %p686_p7 = scmp.ge.s32.totalorder %s963_s27, 1  ;;  %p205_p8 = scmp.lt.s32.totalorder %s963_s27, 3 }
   0xd   : > { %s1183_s12 = scalar_select %p1055_p6, 1, 0 }
   0xe   : > { %p1181_p9 = scmp.eq.s32.totalorder %s1034_s28, 0  ;;  %p1062_p10 = pnand %p686_p7, %p205_p8 }
   0xf   : > { %s965_s14 = smov [#allocation2]   ;;  %s966_s17 = smov [#allocation5]  }
  0x10   : > { %s223_s15 = sshll.u32 %s965_s14, 4  ;;  %p771_p11 = pneg %p1062_p10  ;;  %s224_s15 = int_to_ptr.vmem [resolvable:$true] %s223_s15 }
  0x11   : > { %s239_s18 = sshll.u32 %s966_s17, 4  ;;  %s854_s19 = scalar_lea.vmem %s224_s15, 512  ;;  %s240_s18 = int_to_ptr.vmem [resolvable:$true] %s239_s18 }
  0x12   : > { %p1070_p12 = pnand %p1181_p9, %p771_p11  ;;  %p855_p0 = scmp.ne.s32.totalorder %s224_s15, %s854_s19 }
  0x13   : > { %p862_p3 = scmp.lt.s32.totalorder %s224_s15, %s224_s15  ;;  %p863_p4 = scmp.lt.s32.totalorder %s854_s19, %s854_s19 }
  0x14   : > { %p845_p13 = pneg %p1070_p12 }
  0x15   : > { %p864_p7 = por %p863_p4, %p862_p3 }
  0x16   : > { %p857_p1 = pnand %p855_p0, %p845_p13 }
  0x18   : > { %p858_p2 = pneg %p857_p1 }
  0x1a   : > { %p865_p8 = pnand %p864_p7, %p858_p2 }
  0x1c   : > { %868 = shalt.err (!%p865_p8)
}
  0x1d   : > { %s967_s20 = smov 64   ;;  %s968_s21 = smov 4  }
  0x1e   : > { %774 = dma.hbm_to_vmem [thread:$0]  (!%p1070_p12), %s1176_s3, 512, %s224_s15, [#allocation3], %s967_s20, %s967_s20, %s968_s21  }
  0x1f   : > { %s880_s29 = scalar_lea.vmem %s240_s18, 256  ;;  %p888_p9 = scmp.lt.s32.totalorder %s240_s18, %s240_s18 }
  0x20   : > { %p881_p11 = scmp.ne.s32.totalorder %s240_s18, %s880_s29  ;;  %p889_p6 = scmp.lt.s32.totalorder %s880_s29, %s880_s29 }
  0x22   : > { %p883_p0 = pnand %p881_p11, %p845_p13  ;;  %p890_p3 = por %p889_p6, %p888_p9 }
  0x24   : > { %p884_p1 = pneg %p883_p0 }
  0x26   : > { %p891_p2 = pnand %p890_p3, %p884_p1 }
  0x28   : > { %894 = shalt.err (!%p891_p2)
}
  0x29   : > { %777 = dma.hbm_to_vmem [thread:$0]  (!%p1070_p12), %s1178_s5, 256, %s240_s18, [#allocation6], %s967_s20, %s967_s20, %s968_s21  }
  0x2a   : > { %265 = sbr.rel (%p1062_p10) target bundleno = 1041 (0x411), region = 48  ;;  %p1186_p4 = scmp.eq.s32.totalorder (!%p1062_p10), %s1034_s28, 0 }
  0x2f   : > { %938 = dma.done.wait (%p1186_p4), [#allocation3], 512   ;;  %p1187_p13 = pmov %p1186_p4 }
  0x30   : > { %p1188_p7 = pmov %p1186_p4 }
  0x31   : > { %940 = vsyncadd (%p1187_p13), [#allocation3], 4294966784 }
  0x32   : > { %942 = dma.done.wait (%p1188_p7), [#allocation6], 256   ;;  %p1189_p6 = pmov %p1186_p4 }
  0x33   : > { %p300_p9 = scmp.lt.s32.totalorder %s1034_s28, 1  ;;  %v969_v0 = vmov 0   ;;  %v970_v1 = vmov 0.0   ;;  %vm971_vm0 = vmmov 0   ;;  %v827_v3 = vld [vmem:[%s1174_s1 + $0x8] sm:$0xff]   ;;  %v828_v4 = vld [vmem:[%s1174_s1] sm:$0xff]   ;;  %v306_v5 = vlaneseq }
  0x34   : > { %944 = vsyncadd (%p1189_p6), [#allocation6], 4294967040  ;;  %826 = vset.pattern.permute.xlu0 %v969_v0  ;;  %729 = vmatprep.subr.bf16.mxu0 %v970_v1  ;;  %vm338_vm2 = vcmask 261120   ;;  %v829_v10 = vld [vmem:[#allocation2 + $0x8] sm:$0xff]   ;;  %v830_v11 = vld [vmem:[#allocation2] sm:$0xff]   ;;  %s297_s16 = sand.u32 1, %s955_s25  }
  0x35   : > { %s301_s13 = scalar_select %p300_p9, %s1034_s28, 1  ;;  %737 = vmatprep.subr.bf16.mxu1 %v970_v1  ;;  %733 = vmatprep.mubr.msk.bf16.mxu0 %vm971_vm0, %v970_v1  ;;  %v307_v6 = vand.u32 127, %v306_v5  ;;  %v696_v12 = vld [vmem:[%s1175_s2] ss:$0 sm:$0xff]  ;;  %v831_v20 = vld [vmem:[#allocation2 + $0x18] sm:$0xff]   ;;  %v832_v21 = vld [vmem:[#allocation2 + $0x10] sm:$0xff]  }
  0x36   : > { %741 = vmatprep.mubr.msk.bf16.mxu1 %vm971_vm0, %v970_v1  ;;  %730 = vmatpush3.bf16.msra.mxu0 %v827_v3  ;;  %v700_v22 = vld [vmem:[%s1177_s4] ss:$0 sm:$0xff]  ;;  %v833_v30 = vld [vmem:[#allocation5 + $0x8] sm:$0xff]   ;;  %v705_v32 = vld [vmem:[%s1177_s4 + $0x1] ss:$0 sm:$0xff]  ;;  %s714_s18 = sshll.u32 %s1034_s28, 7 }
  0x37   : > { %s694_s14 = sshll.u32 %s301_s13, 3  ;;  %731 = vmatprep.subr.bf16.mxu0 %v970_v1  ;;  %738 = vmatpush3.bf16.msra.mxu1 %v829_v10  ;;  %v834_v31 = vld [vmem:[#allocation5] sm:$0xff]   ;;  %s1138_s23 = scalar_lea.hbm %s1180_s7, %s714_s18 }
  0x38   : > { %s303_s17 = scalar_lea.vmem %s1173_s0, %s694_s14  ;;  %739 = vmatprep.subr.bf16.mxu1 %v970_v1  ;;  %v709_v40 = vld [vmem:[%s1179_s6] ss:$0 sm:$0xff]  ;;  %s591_s29 = scalar_lea.sflag [#allocation4], %s297_s16 }
  0x39   : > { %v305_v2 = vld [vmem:[%s303_s17] sm:$0xff]  ;;  %s693_s17 = sshll.u32 %s297_s16, 3  ;;  %s972_s9 = smov [#allocation7]  }
  0x3a   : > { %309 = vperm.xlu0 %826, %v305_v2   ;;  %732 = vmatpush3.bf16.msra.mxu0 %v828_v4  ;;  %s299_s19 = scalar_lea.vmem [#allocation7], %s693_s17  ;;  %s899_s13 = sshll.u32 %s972_s9, 4  ;;  %s900_s13 = int_to_ptr.vmem [resolvable:$false] %s899_s13 }
  0x3b   : > { %745 = vmatprep.subr.bf16.mxu0 %v970_v1  ;;  %740 = vmatpush3.bf16.msra.mxu1 %v830_v11  ;;  %s604_s20 = sshll.u32 %s299_s19, 4  ;;  %s901_s28 = scalar_lea.vmem %s900_s13, 256  ;;  %s605_s20 = int_to_ptr.vmem [resolvable:$true] %s604_s20 }
  0x3c   : > { %753 = vmatprep.subr.bf16.mxu1 %v970_v1  ;;  %s895_s8 = scalar_lea.vmem %s605_s20, 128  ;;  %p902_p11 = scmp.lt.s32.totalorder %s605_s20, %s900_s13 }
  0x3d   : > { %p896_p10 = scmp.ne.s32.totalorder %s605_s20, %s895_s8  ;;  %p903_p0 = scmp.lt.s32.totalorder %s901_s28, %s895_s8 }
  0x3f   : > { %p897_p12 = pnand %p896_p10, %p1051_p5  ;;  %p904_p1 = por %p903_p0, %p902_p11 }
  0x41   : > { %p898_p8 = pneg %p897_p12 }
  0x43   : > { %p905_p3 = pnand %p904_p1, %p898_p8 }
  0xb5   : > { %v310_v7 = vpop.permute.xlu0 %309 }
  0xb6   : > { %vm311_vm1 = vcmp.eq.s32.totalorder %v307_v6, %v310_v7 }
  0xb7   : > { %v695_v8 = vsel %vm311_vm1, 1.0, %v970_v1 }
  0xb8   : > { %v314_v9 = vpack.c.bf16 %v695_v8, %v695_v8 }
  0xba   : > { %734 = vmatmul.mubr.msk.bf16.vlgmr.msra.gmra.mxu0 %vm338_vm2, %v314_v9 }
  0xbb   : > { %749 = vmatprep.mubr.msk.bf16.mxu0 %vm971_vm0, %v970_v1  ;;  %746 = vmatpush3.bf16.msra.mxu0 %v831_v20 }
  0xbc   : > { %747 = vmatprep.subr.bf16.mxu0 %v970_v1 }
  0xbf   : > { %748 = vmatpush3.bf16.msra.mxu0 %v832_v21 }
 0x17a   : > { %v376_v13 = vpop.f32.mrf.mxu0 }
 0x17b   : > { %v377_v14 = vadd.f32 %v696_v12, %v376_v13 }
 0x17c   : > { %v735_v15 = vpop.f32.mrf.mxu0 }
 0x17d   : > { %835 = vtanh.f32 %v377_v14 }
 0x17e   : > { %v379_v16 = vpop.f32.mrf.mxu0 }
 0x180   : > { %v736_v17 = vpop.f32.mrf.mxu0 }
 0x18a   : > { %v836_v18 = vpop.eup %835 }
 0x18b   : > { %v383_v19 = vpack.c.bf16 %v836_v18, %v836_v18 }
 0x18d   : > { %742 = vmatmul.mubr.msk.bf16.vlgmr.msra.gmra.mxu1 %vm338_vm2, %v383_v19 }
 0x18e   : > { %757 = vmatprep.mubr.msk.bf16.mxu1 %vm971_vm0, %v970_v1  ;;  %754 = vmatpush3.bf16.msra.mxu1 %v833_v30 }
 0x18f   : > { %755 = vmatprep.subr.bf16.mxu1 %v970_v1 }
 0x192   : > { %756 = vmatpush3.bf16.msra.mxu1 %v834_v31 }
 0x24d   : > { %v444_v23 = vpop.f32.mrf.mxu1 }
 0x24e   : > { %v445_v24 = vadd.f32 %v700_v22, %v444_v23 }
 0x24f   : > { %v743_v25 = vpop.f32.mrf.mxu1 }
 0x250   : > { %837 = vtanh.f32 %v445_v24 }
 0x251   : > { %v447_v26 = vpop.f32.mrf.mxu1 }
 0x253   : > { %v744_v27 = vpop.f32.mrf.mxu1 }
 0x25d   : > { %v838_v28 = vpop.eup %837 }
 0x25e   : > { %v451_v29 = vpack.c.bf16 %v838_v28, %v838_v28 }
 0x260   : > { %750 = vmatmul.mubr.msk.bf16.vlgmr.msra.gmra.mxu0 %vm338_vm2, %v451_v29 }
 0x320   : > { %v514_v33 = vpop.f32.mrf.mxu0 }
 0x321   : > { %v515_v34 = vadd.f32 %v705_v32, %v514_v33 }
 0x322   : > { %v751_v35 = vpop.f32.mrf.mxu0 }
 0x323   : > { %839 = vtanh.f32 %v515_v34 }
 0x324   : > { %v517_v36 = vpop.f32.mrf.mxu0 }
 0x326   : > { %v752_v37 = vpop.f32.mrf.mxu0 }
 0x330   : > { %v840_v38 = vpop.eup %839 }
 0x331   : > { %v521_v39 = vpack.c.bf16 %v840_v38, %v840_v38 }
 0x333   : > { %758 = vmatmul.mubr.msk.bf16.vlgmr.msra.gmra.mxu1 %vm338_vm2, %v521_v39 }
 0x3f3   : > { %v582_v41 = vpop.f32.mrf.mxu1 }
 0x3f4   : > { %v583_v42 = vadd.f32 %v709_v40, %v582_v41 }
 0x3f5   : > { %v759_v43 = vpop.f32.mrf.mxu1 }
 0x3f6   : > { %841 = vtanh.f32 %v583_v42 }
 0x3f7   : > { %v585_v44 = vpop.f32.mrf.mxu1 }
 0x3f9   : > { %v760_v45 = vpop.f32.mrf.mxu1 }
 0x403   : > { %v842_v46 = vpop.eup %841 }
 0x404   : > { %589 = vst [vmem:[%s299_s19] sm:$0xff] %v842_v46 }
 0x405   : > { %908 = shalt.err (!%p905_p3)
}
 0x406   : > { %s909_s14 = scalar_lea.hbm %s1138_s23, 128  ;;  %s913_s17 = scalar_lea.hbm %s1180_s7, 256 }
 0x407   : > { %p910_p2 = scmp.ne.s32.totalorder %s1138_s23, %s909_s14  ;;  %p914_p7 = scmp.lt.s32.totalorder %s1138_s23, %s1180_s7 }
 0x408   : > { %p915_p6 = scmp.lt.s32.totalorder %s913_s17, %s909_s14 }
 0x409   : > { %p911_p4 = pnand %p910_p2, %p1051_p5 }
 0x40a   : > { %p916_p9 = por %p915_p6, %p914_p7 }
 0x40b   : > { %p912_p13 = pneg %p911_p4 }
 0x40d   : > { %p917_p10 = pnand %p916_p9, %p912_p13 }
 0x40f   : > { %920 = shalt.err (!%p917_p10)
}
 0x410   : > { %769 = dma.vmem_to_hbm [thread:$0]  (%p1051_p5), %s605_s20, 128, %s1138_s23, %s591_s29  }
 0x411 PF: > { %p786_p12 = scmp.ge.s32.totalorder %s963_s27, 2  ;;  %s616_s21 = sand.u32 1, %s951_s24  }
 0x412   : > { %p1190_p8 = scmp.ne.s32.totalorder %s1183_s12, 0  ;;  %s617_s22 = scalar_lea.sflag [#allocation4], %s616_s21 }
 0x414   : > { %p779_p11 = pnand %p786_p12, %p1190_p8 }
 0x416   : > { %p780_p0 = pneg %p779_p11 }
 0x418   : > { %946 = dma.done.wait (%p780_p0), %s617_s22, 128  }
 0x419   : > { %948 = vsyncadd (%p780_p0), %s617_s22, 4294967168  ;;  %p19_p1 = scmp.ge.s32.totalorder %s1038_s30, 4   ;;  %s1191_s24 = smov %s955_s25 }
 0x41a   : > { %s1192_s25 = smov %s959_s26  ;;  %s1193_s26 = smov %s1049_s10 }
 0x41b   : > { %s1194_s27 = smov %s1038_s30  ;;  %21 = sbr.rel (!%p19_p1) target bundleno = 5 (0x5), region = 94 }
 0x420   :  { %622 = vsyncpa [#allocation3], 1 }
 0x421   :  { %624 = vsyncpa [#allocation3 + $0x1], 1 }
 0x422   :  { %625 = vsyncpa [#allocation6], 1 }
 0x423   :  { %626 = vsyncpa [#allocation4], 1 }
 0x424   :  { %628 = vsyncpa [#allocation4 + $0x1], 1 }

</bundles_post_ra>
